<compile_context>
chip_gen: v6e
topology: v6e:2x2x1
jax: 0.10.0
libtpu: 0.0.40
codegen_flags: <defaults>
</compile_context>

<pallas_src>
import functools
import math

import jax
import jax.numpy as jnp
from jax.experimental import pallas as pl
from jax.experimental.pallas import tpu as pltpu


# ----------------------------- kernel -------------------------------------- #

def path_ranker_kernel(tcp_ref, wqkv_ref, wom_ref, bias_ref,
                       scores_ref, attn_out_ref, attn_w_ref,
                       *, num_heads, hdim, cui_flag):
    E = 4 * hdim
    hd = E // num_heads
    B = tcp_ref.shape[1]

    t = tcp_ref[0]                      # [B, H]
    c = tcp_ref[1]                      # [B, H]
    p = tcp_ref[2]                      # [B, H]

    # merge_repr = task_rel * cui_rel, built block-wise -> single lane-concat
    # into the 128-lane slab.
    if cui_flag:
        merge = jnp.concatenate([
            t * c,
            p * p,
            jnp.abs(t - p) * jnp.abs(c - p),
            (t * p) * (c * p),
        ], axis=1)                                                      # [B, E]
    else:
        merge = jnp.concatenate([t, p, jnp.abs(t - p), t * p], axis=1)  # [B, E]

    # Fused QKV in-projection: one [B,E] @ [E,3E] matmul.  The q-columns of
    # wqkv / q-part of the bias were pre-scaled by 1/sqrt(head_dim) at init.
    qkv = (jnp.dot(merge, wqkv_ref[...], preferred_element_type=jnp.float32)
           + bias_ref[0:1, :])                                          # [B, 3E]
    q = qkv[:, :E]                     # 128-lane vreg-boundary slices: free
    k = qkv[:, E:2 * E]
    v = qkv[:, 2 * E:]

    # Per-head attention without 32-lane slices: mask q / v to head h's lanes
    # (VPU select) and use full-width lane-dense matmuls.  Context accumulates
    # straight into one [B, E] buffer (no list + concat).
    lane = jax.lax.broadcasted_iota(jnp.int32, (B, E), 1)
    w_sum = jnp.zeros((B, B), jnp.float32)
    ctx = jnp.zeros((B, E), jnp.float32)
    for h in range(num_heads):                          # static unrolled
        head_mask = (lane >= h * hd) & (lane < (h + 1) * hd)
        # masked full-width contraction == q_h @ k_h^T (zeros outside head h)
        s = jax.lax.dot_general(
            jnp.where(head_mask, q, 0.0), k,
            dimension_numbers=(((1,), (1,)), ((), ())),
            preferred_element_type=jnp.float32)                          # [B, B]
        e = jnp.exp(s - jnp.max(s, axis=-1, keepdims=True))
        attn = e / jnp.sum(e, axis=-1, keepdims=True)                    # [B, B]
        w_sum = w_sum + attn
        # attn_h @ v_h lands exactly in head h's columns of ctx (others get +0)
        ctx = ctx + jnp.dot(attn, jnp.where(head_mask, v, 0.0),
                            preferred_element_type=jnp.float32)          # [B, E]

    # out-proj, then mid_layer + ReLU (weights packed side by side in wom).
    attn_out = (jnp.dot(ctx, wom_ref[:, :E], preferred_element_type=jnp.float32)
                + bias_ref[1:2, :E])                                     # [B, E]
    mid = jnp.maximum(
        jnp.dot(attn_out, wom_ref[:, E:E + hdim],
                preferred_element_type=jnp.float32) + bias_ref[2:3, :hdim],
        0.0)                                                             # [B, H]

    # score head: VPU multiply + row reduction (avoids an N=1 MXU matmul).
    scores = (jnp.sum(mid * bias_ref[3:4, :hdim], axis=-1, keepdims=True)
              + bias_ref[4:5, 0:1])                                      # [B, 1]

    scores_ref[...] = scores
    attn_out_ref[...] = attn_out
    attn_w_ref[...] = w_sum * (1.0 / num_heads)          # averaged over heads


# ----------------------------- wrapper -------------------------------------- #

def path_ranker_forward(params, task, cui, path, *, num_heads, cui_flag=True):
    """task/cui/path: [N, B, H] (N independent module forwards) or [B, H]."""
    squeeze = task.ndim == 2
    if squeeze:
        task, cui, path = task[None], cui[None], path[None]
    N, B, H = task.shape
    E = 4 * H
    assert E % num_heads == 0

    # One input stream instead of three separate DMA'd arrays.
    tcp = jnp.stack([task, cui, path], axis=1)           # [N, 3, B, H]

    kernel = functools.partial(path_ranker_kernel, num_heads=num_heads,
                               hdim=H, cui_flag=cui_flag)
    const0 = lambda n: (0, 0)                            # weights: VMEM-resident

    scores, attn_out, attn_w = pl.pallas_call(
        kernel,
        out_shape=(
            jax.ShapeDtypeStruct((N, B, 1), jnp.float32),   # scores
            jax.ShapeDtypeStruct((N, B, E), jnp.float32),   # attn_output
            jax.ShapeDtypeStruct((N, B, B), jnp.float32),   # attn_output_weights
        ),
        grid=(N,),
        in_specs=[
            pl.BlockSpec((None, 3, B, H), lambda n: (n, 0, 0, 0)),  # inputs
            pl.BlockSpec((E, 3 * E), const0),                        # fused QKV
            pl.BlockSpec((E, E + H), const0),                        # [Wo | Wmid]
            pl.BlockSpec((8, 3 * E), const0),                        # biases+score
        ],
        out_specs=(
            pl.BlockSpec((None, B, 1), lambda n: (n, 0, 0)),
            pl.BlockSpec((None, B, E), lambda n: (n, 0, 0)),
            pl.BlockSpec((None, B, B), lambda n: (n, 0, 0)),
        ),
        compiler_params=pltpu.CompilerParams(
            dimension_semantics=("parallel",)),          # both TCs on v7x
    )(tcp, params["w_qkv"], params["w_om"], params["bias_pack"])

    if squeeze:
        scores, attn_out, attn_w = scores[0], attn_out[0], attn_w[0]
    return scores, attn_out, attn_w


# -------------------------- parameter init ---------------------------------- #

def _xavier(key, shape):                  # torch weight layout [out, in]
    fan_out, fan_in = shape
    bound = math.sqrt(6.0 / (fan_in + fan_out))
    return jax.random.uniform(key, shape, jnp.float32, -bound, bound)


def _linear_default(key, shape):          # torch nn.Linear default init
    bound = 1.0 / math.sqrt(shape[1])
    return jax.random.uniform(key, shape, jnp.float32, -bound, bound)


def init_params(key, hdim, num_heads):
    E = 4 * hdim
    hd = E // num_heads
    scale = 1.0 / math.sqrt(hd)
    ks = jax.random.split(key, 6)

    in_proj = _xavier(ks[0], (3 * E, E))              # MHA in_proj_weight
    wq, wk, wv = in_proj[:E], in_proj[E:2 * E], in_proj[2 * E:]
    bq = jnp.zeros((E,), jnp.float32)                 # in_proj_bias = 0
    bk = jnp.zeros((E,), jnp.float32)
    bv = jnp.zeros((E,), jnp.float32)
    wo = _linear_default(ks[1], (E, E))               # out_proj.weight (default)
    bo = jnp.zeros((E,), jnp.float32)                 # out_proj.bias = 0
    wmid = _xavier(ks[2], (hdim, E))                  # mid_layer (xavier)
    bmid = jax.random.uniform(ks[3], (hdim,), jnp.float32,
                              -1.0 / math.sqrt(E), 1.0 / math.sqrt(E))
    wscore = _xavier(ks[4], (1, hdim))                # score (xavier)
    bscore = jax.random.uniform(ks[5], (1,), jnp.float32,
                                -1.0 / math.sqrt(hdim), 1.0 / math.sqrt(hdim))

    # --- packed, MXU-oriented [in, out] parameters -------------------------
    w_qkv = jnp.concatenate([(wq * scale).T, wk.T, wv.T], axis=1)   # [E, 3E]
    w_om = jnp.concatenate([wo.T, wmid.T], axis=1)                  # [E, E+H]
    bias_pack = jnp.zeros((8, 3 * E), jnp.float32)
    bias_pack = bias_pack.at[0, :E].set(bq * scale)        # q bias (pre-scaled)
    bias_pack = bias_pack.at[0, E:2 * E].set(bk)
    bias_pack = bias_pack.at[0, 2 * E:].set(bv)
    bias_pack = bias_pack.at[1, :E].set(bo)
    bias_pack = bias_pack.at[2, :hdim].set(bmid)
    bias_pack = bias_pack.at[3, :hdim].set(wscore[0])
    bias_pack = bias_pack.at[4, 0].set(bscore[0])

    raw = dict(wq=wq, wk=wk, wv=wv, bq=bq, bk=bk, bv=bv, wo=wo, bo=bo,
               wmid=wmid, bmid=bmid, wscore=wscore, bscore=bscore)
    return dict(w_qkv=w_qkv, w_om=w_om, bias_pack=bias_pack, raw=raw)


# ------------------- pure-JAX reference (PyTorch semantics) ------------------ #

def reference_forward(raw, task, cui, path, *, num_heads, cui_flag=True):
    H = task.shape[-1]
    E = 4 * H
    hd = E // num_heads
    hp = jax.lax.Precision.HIGHEST
    task_rel = jnp.concatenate(
        [task, path, jnp.abs(task - path), task * path], axis=1)
    if cui_flag:
        cui_rel = jnp.concatenate(
            [cui, path, jnp.abs(cui - path), cui * path], axis=1)
        merge = task_rel * cui_rel
    else:
        merge = task_rel
    q = jnp.dot(merge, raw["wq"].T, precision=hp) + raw["bq"]
    k = jnp.dot(merge, raw["wk"].T, precision=hp) + raw["bk"]
    v = jnp.dot(merge, raw["wv"].T, precision=hp) + raw["bv"]
    B = merge.shape[0]
    qh = q.reshape(B, num_heads, hd).transpose(1, 0, 2) / math.sqrt(hd)
    kh = k.reshape(B, num_heads, hd).transpose(1, 0, 2)
    vh = v.reshape(B, num_heads, hd).transpose(1, 0, 2)
    s = jnp.einsum("hqd,hkd->hqk", qh, kh, precision=hp)
    attn = jax.nn.softmax(s, axis=-1)
    ctx = jnp.einsum("hqk,hkd->hqd", attn, vh,
                     precision=hp).transpose(1, 0, 2).reshape(B, E)
    attn_out = jnp.dot(ctx, raw["wo"].T, precision=hp) + raw["bo"]
    mid = jax.nn.relu(jnp.dot(attn_out, raw["wmid"].T, precision=hp) + raw["bmid"])
    scores = jnp.dot(mid, raw["wscore"].T, precision=hp) + raw["bscore"]
    return scores, attn_out, jnp.mean(attn, axis=0)


# ------------------------------- main ---------------------------------------- #

if __name__ == "__main__":
    key = jax.random.PRNGKey(0)
    N = 4                 # independent problem instances (grid axis, "parallel")
    B = 8                 # path candidates per instance (attention seq length)
    hdim = 32             # embed dim E = 4*hdim = 128 (one lane width)
    num_heads = 4
    E = 4 * hdim

    key, kt, kc, kp, kw = jax.random.split(key, 5)
    task_inputs = jax.random.normal(kt, (N, B, hdim), jnp.float32)
    cui_inputs = jax.random.normal(kc, (N, B, hdim), jnp.float32)
    path_embeddings = jax.random.normal(kp, (N, B, hdim), jnp.float32)

    params = init_params(kw, hdim, num_heads)

    scores, attn_out, attn_w = path_ranker_forward(
        params, task_inputs, cui_inputs, path_embeddings, num_heads=num_heads)
    jax.block_until_ready((scores, attn_out, attn_w))

    assert scores.shape == (N, B, 1)
    assert attn_out.shape == (N, B, E)
    assert attn_w.shape == (N, B, B)
    assert bool(jnp.all(jnp.isfinite(scores)))
    # attention rows (averaged over heads) must sum to 1
    assert bool(jnp.allclose(jnp.sum(attn_w, axis=-1), 1.0, atol=1e-5))

    # correctness vs pure-JAX reference (loose tolerance: kernel matmuls run at
    # TPU default MXU precision, reference at HIGHEST)
    ref_scores, ref_attn_out, ref_attn_w = jax.vmap(
        lambda t_, c_, p_: reference_forward(
            params["raw"], t_, c_, p_, num_heads=num_heads))(
                task_inputs, cui_inputs, path_embeddings)
    assert bool(jnp.allclose(attn_w, ref_attn_w, atol=5e-2, rtol=5e-2))
    assert bool(jnp.allclose(attn_out, ref_attn_out, atol=5e-2, rtol=5e-2))
    assert bool(jnp.allclose(scores, ref_scores, atol=5e-2, rtol=5e-2))

    print("KERNEL_OK")
</pallas_src>

<mosaic_0001>
module attributes {stable_mosaic.version = 11 : i64} {
  func.func @path_ranker_kernel(%arg0: i32, %arg1: memref<1x3x8x32xf32, #tpu.memory_space<vmem>>, %arg2: memref<128x384xf32, #tpu.memory_space<vmem>>, %arg3: memref<128x160xf32, #tpu.memory_space<vmem>>, %arg4: memref<8x384xf32, #tpu.memory_space<vmem>>, %arg5: memref<1x8x1xf32, #tpu.memory_space<vmem>>, %arg6: memref<1x8x128xf32, #tpu.memory_space<vmem>>, %arg7: memref<1x8x8xf32, #tpu.memory_space<vmem>>) attributes {dimension_semantics = [#tpu.dimension_semantics<parallel>], iteration_bounds = array<i64: 4>, scalar_prefetch = 0 : i64, scratch_operands = 0 : i64, tpu.core_type = #tpu.core_type<tc>, window_params = [{transform_indices = @transform_0, window_bounds = array<i64: 1, 3, 8, 32>}, {pipeline_mode = #tpu.pipeline_mode<synchronous>, transform_indices = @transform_1, window_bounds = array<i64: 128, 384>}, {pipeline_mode = #tpu.pipeline_mode<synchronous>, transform_indices = @transform_2, window_bounds = array<i64: 128, 160>}, {pipeline_mode = #tpu.pipeline_mode<synchronous>, transform_indices = @transform_3, window_bounds = array<i64: 8, 384>}, {transform_indices = @transform_4, window_bounds = array<i64: 1, 8, 1>}, {transform_indices = @transform_5, window_bounds = array<i64: 1, 8, 128>}, {transform_indices = @transform_6, window_bounds = array<i64: 1, 8, 8>}]} {
    %c0 = arith.constant 0 : index
    %c0_0 = arith.constant 0 : index
    %c0_1 = arith.constant 0 : index
    %c0_2 = arith.constant 0 : index
    %0 = vector.load %arg1[%c0, %c0_0, %c0_1, %c0_2] : memref<1x3x8x32xf32, #tpu.memory_space<vmem>>, vector<1x1x8x32xf32>
    %1 = vector.shape_cast %0 : vector<1x1x8x32xf32> to vector<8x32xf32>
    %c0_3 = arith.constant 0 : index
    %c1 = arith.constant 1 : index
    %c0_4 = arith.constant 0 : index
    %c0_5 = arith.constant 0 : index
    %2 = vector.load %arg1[%c0_3, %c1, %c0_4, %c0_5] : memref<1x3x8x32xf32, #tpu.memory_space<vmem>>, vector<1x1x8x32xf32>
    %3 = vector.shape_cast %2 : vector<1x1x8x32xf32> to vector<8x32xf32>
    %c0_6 = arith.constant 0 : index
    %c2 = arith.constant 2 : index
    %c0_7 = arith.constant 0 : index
    %c0_8 = arith.constant 0 : index
    %4 = vector.load %arg1[%c0_6, %c2, %c0_7, %c0_8] : memref<1x3x8x32xf32, #tpu.memory_space<vmem>>, vector<1x1x8x32xf32>
    %5 = vector.shape_cast %4 : vector<1x1x8x32xf32> to vector<8x32xf32>
    %6 = arith.mulf %1, %3 : vector<8x32xf32>
    %7 = arith.mulf %5, %5 : vector<8x32xf32>
    %8 = arith.subf %1, %5 : vector<8x32xf32>
    %9 = math.absf %8 : vector<8x32xf32>
    %10 = arith.subf %3, %5 : vector<8x32xf32>
    %11 = math.absf %10 : vector<8x32xf32>
    %12 = arith.mulf %9, %11 : vector<8x32xf32>
    %13 = arith.mulf %1, %5 : vector<8x32xf32>
    %14 = arith.mulf %3, %5 : vector<8x32xf32>
    %15 = arith.mulf %13, %14 : vector<8x32xf32>
    %16 = tpu.concatenate %6, %7, %12, %15 in 1 : vector<8x32xf32>, vector<8x32xf32>, vector<8x32xf32>, vector<8x32xf32> -> vector<8x128xf32>
    %c0_9 = arith.constant 0 : index
    %c0_10 = arith.constant 0 : index
    %17 = vector.load %arg2[%c0_9, %c0_10] : memref<128x384xf32, #tpu.memory_space<vmem>>, vector<128x384xf32>
    %cst = arith.constant dense<0.000000e+00> : vector<8x384xf32>
    %18 = tpu.matmul %16, %17, %cst {dimension_numbers = #tpu.dot_dimension_numbers<[1], [0], [0], [1], [0, 0, 1, 1], [], []>} : vector<8x128xf32>, vector<128x384xf32>, vector<8x384xf32> -> vector<8x384xf32>
    %c0_11 = arith.constant 0 : index
    %c0_12 = arith.constant 0 : index
    %19 = vector.load %arg4[%c0_11, %c0_12] : memref<8x384xf32, #tpu.memory_space<vmem>>, vector<1x384xf32>
    %20 = vector.broadcast %19 : vector<1x384xf32> to vector<8x384xf32>
    %21 = arith.addf %18, %20 : vector<8x384xf32>
    %22 = vector.extract_strided_slice %21 {offsets = [0, 0], sizes = [8, 128], strides = [1, 1]} : vector<8x384xf32> to vector<8x128xf32>
    %23 = vector.extract_strided_slice %21 {offsets = [0, 128], sizes = [8, 128], strides = [1, 1]} : vector<8x384xf32> to vector<8x128xf32>
    %24 = vector.extract_strided_slice %21 {offsets = [0, 256], sizes = [8, 128], strides = [1, 1]} : vector<8x384xf32> to vector<8x128xf32>
    %25 = tpu.iota {dimensions = array<i32: 1>} : vector<8x128xi32>
    %cst_13 = arith.constant 0.000000e+00 : f32
    %26 = vector.broadcast %cst_13 : f32 to vector<8x8xf32>
    %cst_14 = arith.constant 0.000000e+00 : f32
    %27 = vector.broadcast %cst_14 : f32 to vector<8x128xf32>
    %c0_i32 = arith.constant 0 : i32
    %28 = vector.broadcast %c0_i32 : i32 to vector<8x128xi32>
    %29 = arith.cmpi sge, %25, %28 : vector<8x128xi32>
    %c32_i32 = arith.constant 32 : i32
    %30 = vector.broadcast %c32_i32 : i32 to vector<8x128xi32>
    %31 = arith.cmpi slt, %25, %30 : vector<8x128xi32>
    %32 = arith.andi %29, %31 : vector<8x128xi1>
    %cst_15 = arith.constant 0.000000e+00 : f32
    %33 = vector.broadcast %cst_15 : f32 to vector<8x128xf32>
    %34 = arith.select %32, %22, %33 : vector<8x128xi1>, vector<8x128xf32>
    %cst_16 = arith.constant dense<0.000000e+00> : vector<8x8xf32>
    %35 = tpu.matmul %34, %23, %cst_16 {dimension_numbers = #tpu.dot_dimension_numbers<[1], [1], [0], [0], [0, 0, 1, 0], [], []>} : vector<8x128xf32>, vector<8x128xf32>, vector<8x8xf32> -> vector<8x8xf32>
    %cst_17 = arith.constant dense<0xFF800000> : vector<8xf32>
    %36 = vector.multi_reduction <maximumf>, %35, %cst_17 [1] : vector<8x8xf32> to vector<8xf32>
    %37 = vector.shape_cast %36 : vector<8xf32> to vector<8x1xf32>
    %38 = vector.broadcast %37 : vector<8x1xf32> to vector<8x8xf32>
    %39 = arith.subf %35, %38 : vector<8x8xf32>
    %40 = math.exp %39 : vector<8x8xf32>
    %cst_18 = arith.constant dense<0.000000e+00> : vector<8xf32>
    %41 = vector.multi_reduction <add>, %40, %cst_18 [1] : vector<8x8xf32> to vector<8xf32>
    %42 = vector.shape_cast %41 : vector<8xf32> to vector<8x1xf32>
    %43 = vector.broadcast %42 : vector<8x1xf32> to vector<8x8xf32>
    %44 = arith.divf %40, %43 : vector<8x8xf32>
    %45 = arith.addf %26, %44 : vector<8x8xf32>
    %cst_19 = arith.constant 0.000000e+00 : f32
    %46 = vector.broadcast %cst_19 : f32 to vector<8x128xf32>
    %47 = arith.select %32, %24, %46 : vector<8x128xi1>, vector<8x128xf32>
    %cst_20 = arith.constant dense<0.000000e+00> : vector<8x128xf32>
    %48 = tpu.matmul %44, %47, %cst_20 {dimension_numbers = #tpu.dot_dimension_numbers<[1], [0], [0], [1], [0, 0, 1, 1], [], []>} : vector<8x8xf32>, vector<8x128xf32>, vector<8x128xf32> -> vector<8x128xf32>
    %49 = arith.addf %27, %48 : vector<8x128xf32>
    %c32_i32_21 = arith.constant 32 : i32
    %50 = vector.broadcast %c32_i32_21 : i32 to vector<8x128xi32>
    %51 = arith.cmpi sge, %25, %50 : vector<8x128xi32>
    %c64_i32 = arith.constant 64 : i32
    %52 = vector.broadcast %c64_i32 : i32 to vector<8x128xi32>
    %53 = arith.cmpi slt, %25, %52 : vector<8x128xi32>
    %54 = arith.andi %51, %53 : vector<8x128xi1>
    %cst_22 = arith.constant 0.000000e+00 : f32
    %55 = vector.broadcast %cst_22 : f32 to vector<8x128xf32>
    %56 = arith.select %54, %22, %55 : vector<8x128xi1>, vector<8x128xf32>
    %cst_23 = arith.constant dense<0.000000e+00> : vector<8x8xf32>
    %57 = tpu.matmul %56, %23, %cst_23 {dimension_numbers = #tpu.dot_dimension_numbers<[1], [1], [0], [0], [0, 0, 1, 0], [], []>} : vector<8x128xf32>, vector<8x128xf32>, vector<8x8xf32> -> vector<8x8xf32>
    %cst_24 = arith.constant dense<0xFF800000> : vector<8xf32>
    %58 = vector.multi_reduction <maximumf>, %57, %cst_24 [1] : vector<8x8xf32> to vector<8xf32>
    %59 = vector.shape_cast %58 : vector<8xf32> to vector<8x1xf32>
    %60 = vector.broadcast %59 : vector<8x1xf32> to vector<8x8xf32>
    %61 = arith.subf %57, %60 : vector<8x8xf32>
    %62 = math.exp %61 : vector<8x8xf32>
    %cst_25 = arith.constant dense<0.000000e+00> : vector<8xf32>
    %63 = vector.multi_reduction <add>, %62, %cst_25 [1] : vector<8x8xf32> to vector<8xf32>
    %64 = vector.shape_cast %63 : vector<8xf32> to vector<8x1xf32>
    %65 = vector.broadcast %64 : vector<8x1xf32> to vector<8x8xf32>
    %66 = arith.divf %62, %65 : vector<8x8xf32>
    %67 = arith.addf %45, %66 : vector<8x8xf32>
    %cst_26 = arith.constant 0.000000e+00 : f32
    %68 = vector.broadcast %cst_26 : f32 to vector<8x128xf32>
    %69 = arith.select %54, %24, %68 : vector<8x128xi1>, vector<8x128xf32>
    %cst_27 = arith.constant dense<0.000000e+00> : vector<8x128xf32>
    %70 = tpu.matmul %66, %69, %cst_27 {dimension_numbers = #tpu.dot_dimension_numbers<[1], [0], [0], [1], [0, 0, 1, 1], [], []>} : vector<8x8xf32>, vector<8x128xf32>, vector<8x128xf32> -> vector<8x128xf32>
    %71 = arith.addf %49, %70 : vector<8x128xf32>
    %c64_i32_28 = arith.constant 64 : i32
    %72 = vector.broadcast %c64_i32_28 : i32 to vector<8x128xi32>
    %73 = arith.cmpi sge, %25, %72 : vector<8x128xi32>
    %c96_i32 = arith.constant 96 : i32
    %74 = vector.broadcast %c96_i32 : i32 to vector<8x128xi32>
    %75 = arith.cmpi slt, %25, %74 : vector<8x128xi32>
    %76 = arith.andi %73, %75 : vector<8x128xi1>
    %cst_29 = arith.constant 0.000000e+00 : f32
    %77 = vector.broadcast %cst_29 : f32 to vector<8x128xf32>
    %78 = arith.select %76, %22, %77 : vector<8x128xi1>, vector<8x128xf32>
    %cst_30 = arith.constant dense<0.000000e+00> : vector<8x8xf32>
    %79 = tpu.matmul %78, %23, %cst_30 {dimension_numbers = #tpu.dot_dimension_numbers<[1], [1], [0], [0], [0, 0, 1, 0], [], []>} : vector<8x128xf32>, vector<8x128xf32>, vector<8x8xf32> -> vector<8x8xf32>
    %cst_31 = arith.constant dense<0xFF800000> : vector<8xf32>
    %80 = vector.multi_reduction <maximumf>, %79, %cst_31 [1] : vector<8x8xf32> to vector<8xf32>
    %81 = vector.shape_cast %80 : vector<8xf32> to vector<8x1xf32>
    %82 = vector.broadcast %81 : vector<8x1xf32> to vector<8x8xf32>
    %83 = arith.subf %79, %82 : vector<8x8xf32>
    %84 = math.exp %83 : vector<8x8xf32>
    %cst_32 = arith.constant dense<0.000000e+00> : vector<8xf32>
    %85 = vector.multi_reduction <add>, %84, %cst_32 [1] : vector<8x8xf32> to vector<8xf32>
    %86 = vector.shape_cast %85 : vector<8xf32> to vector<8x1xf32>
    %87 = vector.broadcast %86 : vector<8x1xf32> to vector<8x8xf32>
    %88 = arith.divf %84, %87 : vector<8x8xf32>
    %89 = arith.addf %67, %88 : vector<8x8xf32>
    %cst_33 = arith.constant 0.000000e+00 : f32
    %90 = vector.broadcast %cst_33 : f32 to vector<8x128xf32>
    %91 = arith.select %76, %24, %90 : vector<8x128xi1>, vector<8x128xf32>
    %cst_34 = arith.constant dense<0.000000e+00> : vector<8x128xf32>
    %92 = tpu.matmul %88, %91, %cst_34 {dimension_numbers = #tpu.dot_dimension_numbers<[1], [0], [0], [1], [0, 0, 1, 1], [], []>} : vector<8x8xf32>, vector<8x128xf32>, vector<8x128xf32> -> vector<8x128xf32>
    %93 = arith.addf %71, %92 : vector<8x128xf32>
    %c96_i32_35 = arith.constant 96 : i32
    %94 = vector.broadcast %c96_i32_35 : i32 to vector<8x128xi32>
    %95 = arith.cmpi sge, %25, %94 : vector<8x128xi32>
    %c128_i32 = arith.constant 128 : i32
    %96 = vector.broadcast %c128_i32 : i32 to vector<8x128xi32>
    %97 = arith.cmpi slt, %25, %96 : vector<8x128xi32>
    %98 = arith.andi %95, %97 : vector<8x128xi1>
    %cst_36 = arith.constant 0.000000e+00 : f32
    %99 = vector.broadcast %cst_36 : f32 to vector<8x128xf32>
    %100 = arith.select %98, %22, %99 : vector<8x128xi1>, vector<8x128xf32>
    %cst_37 = arith.constant dense<0.000000e+00> : vector<8x8xf32>
    %101 = tpu.matmul %100, %23, %cst_37 {dimension_numbers = #tpu.dot_dimension_numbers<[1], [1], [0], [0], [0, 0, 1, 0], [], []>} : vector<8x128xf32>, vector<8x128xf32>, vector<8x8xf32> -> vector<8x8xf32>
    %cst_38 = arith.constant dense<0xFF800000> : vector<8xf32>
    %102 = vector.multi_reduction <maximumf>, %101, %cst_38 [1] : vector<8x8xf32> to vector<8xf32>
    %103 = vector.shape_cast %102 : vector<8xf32> to vector<8x1xf32>
    %104 = vector.broadcast %103 : vector<8x1xf32> to vector<8x8xf32>
    %105 = arith.subf %101, %104 : vector<8x8xf32>
    %106 = math.exp %105 : vector<8x8xf32>
    %cst_39 = arith.constant dense<0.000000e+00> : vector<8xf32>
    %107 = vector.multi_reduction <add>, %106, %cst_39 [1] : vector<8x8xf32> to vector<8xf32>
    %108 = vector.shape_cast %107 : vector<8xf32> to vector<8x1xf32>
    %109 = vector.broadcast %108 : vector<8x1xf32> to vector<8x8xf32>
    %110 = arith.divf %106, %109 : vector<8x8xf32>
    %111 = arith.addf %89, %110 : vector<8x8xf32>
    %cst_40 = arith.constant 0.000000e+00 : f32
    %112 = vector.broadcast %cst_40 : f32 to vector<8x128xf32>
    %113 = arith.select %98, %24, %112 : vector<8x128xi1>, vector<8x128xf32>
    %cst_41 = arith.constant dense<0.000000e+00> : vector<8x128xf32>
    %114 = tpu.matmul %110, %113, %cst_41 {dimension_numbers = #tpu.dot_dimension_numbers<[1], [0], [0], [1], [0, 0, 1, 1], [], []>} : vector<8x8xf32>, vector<8x128xf32>, vector<8x128xf32> -> vector<8x128xf32>
    %115 = arith.addf %93, %114 : vector<8x128xf32>
    %c0_42 = arith.constant 0 : index
    %c0_43 = arith.constant 0 : index
    %116 = vector.load %arg3[%c0_42, %c0_43] : memref<128x160xf32, #tpu.memory_space<vmem>>, vector<128x128xf32>
    %cst_44 = arith.constant dense<0.000000e+00> : vector<8x128xf32>
    %117 = tpu.matmul %115, %116, %cst_44 {dimension_numbers = #tpu.dot_dimension_numbers<[1], [0], [0], [1], [0, 0, 1, 1], [], []>} : vector<8x128xf32>, vector<128x128xf32>, vector<8x128xf32> -> vector<8x128xf32>
    %c1_45 = arith.constant 1 : index
    %c0_46 = arith.constant 0 : index
    %118 = vector.load %arg4[%c1_45, %c0_46] : memref<8x384xf32, #tpu.memory_space<vmem>>, vector<1x128xf32>
    %119 = vector.broadcast %118 : vector<1x128xf32> to vector<8x128xf32>
    %120 = arith.addf %117, %119 : vector<8x128xf32>
    %c0_47 = arith.constant 0 : index
    %c128 = arith.constant 128 : index
    %121 = vector.load %arg3[%c0_47, %c128] : memref<128x160xf32, #tpu.memory_space<vmem>>, vector<128x32xf32>
    %cst_48 = arith.constant dense<0.000000e+00> : vector<8x32xf32>
    %122 = tpu.matmul %120, %121, %cst_48 {dimension_numbers = #tpu.dot_dimension_numbers<[1], [0], [0], [1], [0, 0, 1, 1], [], []>} : vector<8x128xf32>, vector<128x32xf32>, vector<8x32xf32> -> vector<8x32xf32>
    %c2_49 = arith.constant 2 : index
    %c0_50 = arith.constant 0 : index
    %123 = vector.load %arg4[%c2_49, %c0_50] : memref<8x384xf32, #tpu.memory_space<vmem>>, vector<1x32xf32>
    %124 = vector.broadcast %123 : vector<1x32xf32> to vector<8x32xf32>
    %125 = arith.addf %122, %124 : vector<8x32xf32>
    %cst_51 = arith.constant 0.000000e+00 : f32
    %126 = vector.broadcast %cst_51 : f32 to vector<8x32xf32>
    %127 = arith.maximumf %125, %126 : vector<8x32xf32>
    %c3 = arith.constant 3 : index
    %c0_52 = arith.constant 0 : index
    %128 = vector.load %arg4[%c3, %c0_52] : memref<8x384xf32, #tpu.memory_space<vmem>>, vector<1x32xf32>
    %129 = vector.broadcast %128 : vector<1x32xf32> to vector<8x32xf32>
    %130 = arith.mulf %127, %129 : vector<8x32xf32>
    %cst_53 = arith.constant dense<0.000000e+00> : vector<8xf32>
    %131 = vector.multi_reduction <add>, %130, %cst_53 [1] : vector<8x32xf32> to vector<8xf32>
    %132 = vector.shape_cast %131 : vector<8xf32> to vector<8x1xf32>
    %c4 = arith.constant 4 : index
    %c0_54 = arith.constant 0 : index
    %133 = vector.load %arg4[%c4, %c0_54] : memref<8x384xf32, #tpu.memory_space<vmem>>, vector<1x1xf32>
    %134 = vector.broadcast %133 : vector<1x1xf32> to vector<8x1xf32>
    %135 = arith.addf %132, %134 : vector<8x1xf32>
    %c0_55 = arith.constant 0 : index
    %c0_56 = arith.constant 0 : index
    %c0_57 = arith.constant 0 : index
    %136 = vector.load %arg5[%c0_55, %c0_56, %c0_57] : memref<1x8x1xf32, #tpu.memory_space<vmem>>, vector<1x8x1xf32>
    %137 = vector.shape_cast %136 : vector<1x8x1xf32> to vector<8x1xf32>
    %138 = vector.shape_cast %135 : vector<8x1xf32> to vector<1x8x1xf32>
    tpu.vector_store %arg5[%c0_55, %c0_56, %c0_57], %138 {strides = array<i32>} : memref<1x8x1xf32, #tpu.memory_space<vmem>>, vector<1x8x1xf32>,
    %c0_58 = arith.constant 0 : index
    %c0_59 = arith.constant 0 : index
    %c0_60 = arith.constant 0 : index
    %139 = vector.load %arg6[%c0_58, %c0_59, %c0_60] : memref<1x8x128xf32, #tpu.memory_space<vmem>>, vector<1x8x128xf32>
    %140 = vector.shape_cast %139 : vector<1x8x128xf32> to vector<8x128xf32>
    %141 = vector.shape_cast %120 : vector<8x128xf32> to vector<1x8x128xf32>
    tpu.vector_store %arg6[%c0_58, %c0_59, %c0_60], %141 {strides = array<i32>} : memref<1x8x128xf32, #tpu.memory_space<vmem>>, vector<1x8x128xf32>,
    %cst_61 = arith.constant 2.500000e-01 : f32
    %142 = vector.broadcast %cst_61 : f32 to vector<8x8xf32>
    %143 = arith.mulf %111, %142 : vector<8x8xf32>
    %c0_62 = arith.constant 0 : index
    %c0_63 = arith.constant 0 : index
    %c0_64 = arith.constant 0 : index
    %144 = vector.load %arg7[%c0_62, %c0_63, %c0_64] : memref<1x8x8xf32, #tpu.memory_space<vmem>>, vector<1x8x8xf32>
    %145 = vector.shape_cast %144 : vector<1x8x8xf32> to vector<8x8xf32>
    %146 = vector.shape_cast %143 : vector<8x8xf32> to vector<1x8x8xf32>
    tpu.vector_store %arg7[%c0_62, %c0_63, %c0_64], %146 {strides = array<i32>} : memref<1x8x8xf32, #tpu.memory_space<vmem>>, vector<1x8x8xf32>,
    return
  }
  func.func @transform_0(%arg0: i32) -> (i32, i32, i32, i32) {
    %c0_i32 = arith.constant 0 : i32
    %c0_i32_0 = arith.constant 0 : i32
    %c0_i32_1 = arith.constant 0 : i32
    %c0_i32_2 = arith.constant 0 : i32
    return %arg0, %c0_i32, %c0_i32_0, %c0_i32_1 : i32, i32, i32, i32
  }
  func.func @transform_1(%arg0: i32) -> (i32, i32) {
    %c0_i32 = arith.constant 0 : i32
    %c0_i32_0 = arith.constant 0 : i32
    %c0_i32_1 = arith.constant 0 : i32
    return %c0_i32, %c0_i32_0 : i32, i32
  }
  func.func @transform_2(%arg0: i32) -> (i32, i32) {
    %c0_i32 = arith.constant 0 : i32
    %c0_i32_0 = arith.constant 0 : i32
    %c0_i32_1 = arith.constant 0 : i32
    return %c0_i32, %c0_i32_0 : i32, i32
  }
  func.func @transform_3(%arg0: i32) -> (i32, i32) {
    %c0_i32 = arith.constant 0 : i32
    %c0_i32_0 = arith.constant 0 : i32
    %c0_i32_1 = arith.constant 0 : i32
    return %c0_i32, %c0_i32_0 : i32, i32
  }
  func.func @transform_4(%arg0: i32) -> (i32, i32, i32) {
    %c0_i32 = arith.constant 0 : i32
    %c0_i32_0 = arith.constant 0 : i32
    %c0_i32_1 = arith.constant 0 : i32
    return %arg0, %c0_i32, %c0_i32_0 : i32, i32, i32
  }
  func.func @transform_5(%arg0: i32) -> (i32, i32, i32) {
    %c0_i32 = arith.constant 0 : i32
    %c0_i32_0 = arith.constant 0 : i32
    %c0_i32_1 = arith.constant 0 : i32
    return %arg0, %c0_i32, %c0_i32_0 : i32, i32, i32
  }
  func.func @transform_6(%arg0: i32) -> (i32, i32, i32) {
    %c0_i32 = arith.constant 0 : i32
    %c0_i32_0 = arith.constant 0 : i32
    %c0_i32_1 = arith.constant 0 : i32
    return %arg0, %c0_i32, %c0_i32_0 : i32, i32, i32
  }
}

</mosaic_0001>

<bundles_post_ra>
// kernel: tpu_custom_call.1
= control target key start
LH: loop header
LB: loop body
LE: loop exit
PB: predicated region body
PF: predicated region fallthrough
CT: control target
= control target key end

     0   :  { %12 = vsyncpa [#allocation3], 0  ;;  %s2564_s0 = inlined_call_operand.hbm [shape: f32[4,3,8,32], index: 0, kind: input, shape index: {}]   ;;  %s2565_s1 = inlined_call_operand.vmem [shape: f32[128,384], index: 1, kind: input, shape index: {}]   ;;  %s2566_s2 = inlined_call_operand.vmem [shape: f32[128,160], index: 2, kind: input, shape index: {}]   ;;  %s2567_s3 = inlined_call_operand.vmem [shape: f32[8,384], index: 3, kind: input, shape index: {}]   ;;  %s2568_s4 = inlined_call_operand.vmem [shape: f32[4,8,1], index: 4, kind: output, shape index: {0}]   ;;  %s2569_s5 = inlined_call_operand.hbm [shape: f32[4,8,128], index: 5, kind: output, shape index: {1}]   ;;  %s2570_s6 = inlined_call_operand.hbm [shape: f32[4,8,8], index: 6, kind: output, shape index: {2}]  }
   0x1   :  { %14 = vsyncpa [#allocation3 + $0x1], 0 }
   0x2   :  { %15 = vsyncpa [#allocation4], 0 }
   0x3   :  { %17 = vsyncpa [#allocation4 + $0x1], 0 }
   0x4   :  { %18 = vsyncpa [#allocation7], 0 }
   0x5   :  { %20 = vsyncpa [#allocation7 + $0x1], 0  ;;  %s2013_s21 = smov 0   ;;  %s2015_s22 = smov 0  }
   0x6   :  { %s2017_s23 = smov 0   ;;  %s2019_s24 = smov 0  }
   0x7 LB: > { %s2034_s25 = sadd.s32 4294967295, %s1966_s24   ;;  %s1527_s26 = sadd.s32 4294967294, %s1966_s24   ;;  %s1966_s24 = sphi %s2019_s24, %s2587_s24   ;;  %s1962_s23 = sphi %s2017_s23, %s2586_s23   ;;  %s1958_s22 = sphi %s2015_s22, %s2585_s22   ;;  %s1954_s21 = sphi %s2013_s21, %s2584_s21  }
   0x8   : > { %s2038_s27 = sadd.s32 1, %s1966_s24   ;;  %s33_s28 = sadd.s32 1, %s1962_s23 }
   0x9   : > { %s30_s29 = ssub.s32 %s1966_s24, %s2038_s27  ;;  %p40_p0 = scmp.ne.s32.totalorder %s1962_s23, %s1958_s22 }
   0xa   : > { %p31_p1 = scmp.eq.s32.totalorder %s30_s29, 0  ;;  %p41_p2 = scmp.eq.s32.totalorder %s1966_s24, 0 }
   0xb   : > { %p46_p3 = scmp.ne.s32.totalorder %s1958_s22, %s1954_s21  ;;  %p47_p4 = scmp.eq.s32.totalorder %s2034_s25, 0 }
   0xc   : > { %s2050_s30 = scalar_select %p31_p1, %s1962_s23, %s33_s28  }
   0xd   : > { %p42_p5 = por %p41_p2, %p40_p0  ;;  %p2052_p6 = por %p47_p4, %p46_p3 }
   0xe   : > { %p159_p7 = scmp.eq.s32.totalorder %s2034_s25, 3  ;;  %p165_p8 = scmp.eq.s32.totalorder %s1527_s26, 3 }
   0xf   : > { %s2574_s7 = scalar_select %p2052_p6, 1, 0 }
  0x10   : > { %p1787_p9 = scmp.lt.s32.totalorder %s1966_s24, 4  ;;  %p2058_p10 = por %p159_p7, %p40_p0 }
  0x11   : > { %p2062_p11 = por %p165_p8, %p46_p3  ;;  %s220_s10 = sand.u32 1, %s1962_s23  }
  0x12   : > { %s2575_s8 = scalar_select %p2058_p10, 1, 0 }
  0x13   : > { %s2576_s9 = scalar_select %p2062_p11, 1, 0 }
  0x14   : > { %s1768_s11 = smul.u32 384, %s1966_s24  ;;  %p2073_p12 = pnand %p1787_p9, %p42_p5 }
  0x15   : > { %s1767_s12 = smul.u32 24, %s220_s10  ;;  %s2079_s19 = scalar_lea.sflag [#allocation3], %s220_s10 }
  0x16   : > { %s2071_s15 = scalar_lea.hbm %s2564_s0, %s1768_s11  ;;  %p1846_p0 = pneg %p2073_p12 }
  0x17   : > { %s224_s17 = scalar_lea.vmem [#allocation2], %s1767_s12  ;;  %s1844_s20 = scalar_lea.hbm %s2071_s15, 384 }
  0x18   : > { %s231_s18 = sshll.u32 %s224_s17, 4  ;;  %p1845_p13 = scmp.ne.s32.totalorder %s2071_s15, %s1844_s20  ;;  %s2077_s18 = int_to_ptr.vmem [resolvable:$true] %s231_s18 }
  0x19   : > { %s1849_s29 = scalar_lea.hbm %s2564_s0, 1536  ;;  %p1850_p3 = scmp.lt.s32.totalorder %s2071_s15, %s2564_s0 }
  0x1a   : > { %p1847_p1 = pnand %p1846_p0, %p1845_p13  ;;  %p1851_p4 = scmp.lt.s32.totalorder %s1849_s29, %s1844_s20 }
  0x1c   : > { %p1848_p2 = pneg %p1847_p1  ;;  %p1852_p5 = por %p1851_p4, %p1850_p3 }
  0x1e   : > { %p1853_p7 = pnand %p1852_p5, %p1848_p2 }
  0x20   : > { %1856 = shalt.err (!%p1853_p7)
}
  0x21   : > { %s1857_s10 = scalar_lea.vmem %s2077_s18, 384  ;;  %s1968_s12 = smov [#allocation2]  }
  0x22   : > { %p1858_p8 = scmp.ne.s32.totalorder %s2077_s18, %s1857_s10  ;;  %s1862_s14 = sshll.u32 %s1968_s12, 4  ;;  %s1863_s14 = int_to_ptr.vmem [resolvable:$false] %s1862_s14 }
  0x23   : > { %s1864_s17 = scalar_lea.vmem %s1863_s14, 768  ;;  %p1865_p1 = scmp.lt.s32.totalorder %s2077_s18, %s1863_s14 }
  0x24   : > { %p1860_p9 = pnand %p1858_p8, %p1846_p0  ;;  %p1866_p11 = scmp.lt.s32.totalorder %s1864_s17, %s1857_s10 }
  0x26   : > { %p1861_p13 = pneg %p1860_p9  ;;  %p1867_p10 = por %p1866_p11, %p1865_p1 }
  0x28   : > { %p1868_p6 = pnand %p1867_p10, %p1861_p13 }
  0x2a   : > { %1871 = shalt.err (!%p1868_p6)
}
  0x2b   : > { %s1969_s20 = smov 128   ;;  %s1970_s26 = smov 8  }
  0x2c   : > { %1779 = dma.hbm_to_vmem [thread:$0]  (!%p2073_p12), %s2071_s15, 384, %s2077_s18, %s2079_s19, %s1969_s20, %s1969_s20, %s1970_s26  }
  0x2d   : > { %p1531_p0 = scmp.ge.s32.totalorder %s1966_s24, 1  ;;  %p239_p2 = scmp.lt.s32.totalorder %s1966_s24, 5 }
  0x2f   : > { %p240_p3 = pnand %p1531_p0, %p239_p2 }
  0x30   : > { %s2103_s28 = sand.u32 (!%p240_p3), 1, %s1958_s22   ;;  %p2578_p6 = scmp.ne.s32.totalorder (!%p240_p3), %s2574_s7, 0 }
  0x31   : > { %243 = sbr.rel (%p240_p3) target bundleno = 2129 (0x851), region = 36  ;;  %s246_s11 = scalar_lea.sflag (!%p240_p3), [#allocation3], %s2103_s28 }
  0x32   : > { %s1769_s29 = smul.u32 (!%p240_p3), 24, %s2103_s28 }
  0x34   : > { %s249_s13 = scalar_lea.vmem (!%p240_p3), [#allocation2], %s1769_s29 }
  0x36   : > { %1941 = dma.done.wait (%p2578_p6), %s246_s11, 384  }
  0x37   : > { %1943 = vsyncadd (%p2578_p6), %s246_s11, 4294966912  ;;  %v1971_v0 = vmov 0.0   ;;  %vm1972_vm0 = vmmov 0   ;;  %v1536_v1 = vld [vmem:[%s249_s13 + $0x10] sm:$0xff]  ;;  %v291_v2 = vld [vmem:[%s249_s13] sm:$0xff]  ;;  %s1973_s11 = smov 32  }
  0x38   : > { %1622 = vmatprep.subr.mxu1 %v1971_v0  ;;  %453 = vmatprep.mubr.f32.mxu0 %v1971_v0  ;;  %v1535_v3 = vld [vmem:[%s249_s13 + $0x8] sm:$0xff]  ;;  %v297_v4 = vmul.f32 %v1536_v1, %v1536_v1  ;;  %v298_v5 = vsub.f32 %v291_v2, %v1536_v1  ;;  %v303_v7 = vmul.f32 %v1536_v1, %v291_v2  ;;  %v370_v8 = vld [vmem:[%s2565_s1 + $0x170] sm:$0xff]  ;;  %v371_v10 = vld [vmem:[%s2565_s1 + $0x178] sm:$0xff]  ;;  %s1974_s10 = smov 96   ;;  %s1975_s17 = smov 64   ;;  %vm318_vm1 = vcmask 261120  }
  0x39   : > { %1654 = vmatprep.mubr.msk.f32.mxu1 %vm1972_vm0, %v1971_v0  ;;  %v300_v6 = vsub.f32 %v1535_v3, %v1536_v1  ;;  %v369_v9 = vld [vmem:[%s2565_s1 + $0x168] sm:$0xff]  ;;  %v304_v11 = vmul.f32 %v1536_v1, %v1535_v3  ;;  %389 = vmatprep.subr.mxu0 %v370_v8  ;;  %v367_v12 = vld [vmem:[%s2565_s1 + $0x158] sm:$0xff]  ;;  %v366_v13 = vld [vmem:[%s2565_s1 + $0x150] sm:$0xff]  ;;  %v2133_v15 = vmul.f32 %v1535_v3, %v291_v2  ;;  %vm320_vm2 = vcmask 523264   ;;  %s1532_s13 = sshll.u32 %s2103_s28, 3  ;;  %s1367_s19 = scalar_lea.sflag [#allocation4], %s2103_s28 }
  0x3a   : > { %1623 = vmatpush3.msra.mxu1 %v371_v10  ;;  %v368_v14 = vld [vmem:[%s2565_s1 + $0x160] sm:$0xff]  ;;  %307 = vrot.lane.b32.xlu0 %v297_v4, %s1973_s11  ;;  %v299_v16 = vand.u32 2147483647, %v298_v5  ;;  %v363_v21 = vld [vmem:[%s2565_s1 + $0x138] sm:$0xff]  ;;  %v365_v22 = vld [vmem:[%s2565_s1 + $0x148] sm:$0xff]  ;;  %vm322_vm3 = vcmask 785408   ;;  %v374_v5 = vlaneseq }
  0x3b   : > { %v301_v17 = vand.u32 2147483647, %v300_v6  ;;  %390 = vmatpush1.msra.mxu0 %v369_v9  ;;  %v364_v18 = vld [vmem:[%s2565_s1 + $0x140] sm:$0xff]  ;;  %v305_v19 = vmul.f32 %v304_v11, %v303_v7  ;;  %1624 = vmatprep.subr.mxu1 %v1971_v0  ;;  %v361_v23 = vld [vmem:[%s2565_s1 + $0x128] sm:$0xff]  ;;  %v362_v25 = vld [vmem:[%s2565_s1 + $0x130] sm:$0xff]  ;;  %vm606_vm8 = vcmask 64512  }
  0x3c   : > { %391 = vmatprep.subr.mxu0 %v367_v12  ;;  %1625 = vmatpush3.msra.mxu1 %v368_v14  ;;  %v360_v24 = vld [vmem:[%s2565_s1 + $0x120] sm:$0xff]  ;;  %v358_v26 = vld [vmem:[%s2565_s1 + $0x110] sm:$0xff]  ;;  %v357_v27 = vld [vmem:[%s2565_s1 + $0x108] sm:$0xff]  ;;  %v375_v6 = vshrl.u32 %v374_v5, 7  ;;  %v2287_v10 = vand.u32 127, %v374_v5  ;;  %s2406_s15 = scalar_lea.vmem [#allocation6], %s1532_s13 }
  0x3d   : > { %v302_v20 = vmul.f32 %v301_v17, %v299_v16  ;;  %392 = vmatpush1.msra.mxu0 %v366_v13  ;;  %315 = vrot.lane.b32.xlu1 %v305_v19, %s1974_s10  ;;  %v359_v28 = vld [vmem:[%s2565_s1 + $0x118] sm:$0xff]  ;;  %v354_v30 = vld [vmem:[%s2565_s1 + $0xf0] sm:$0xff]  ;;  %v356_v31 = vld [vmem:[%s2565_s1 + $0x100] sm:$0xff]  ;;  %s279_s14 = scalar_lea.vmem [#allocation5], %s1532_s13  ;;  %s2573_s13 = sshll.u32 %s2034_s25, 7 }
  0x3e   : > { %393 = vmatprep.subr.mxu0 %v364_v18  ;;  %1626 = vmatprep.subr.mxu1 %v1971_v0  ;;  %v355_v29 = vld [vmem:[%s2565_s1 + $0xf8] sm:$0xff]  ;;  %v352_v32 = vld [vmem:[%s2565_s1 + $0xe0] sm:$0xff]  ;;  %v353_v34 = vld [vmem:[%s2565_s1 + $0xe8] sm:$0xff]  ;;  %v380_v7 = vsub.s32 1, %v375_v6  ;;  %v376_v9 = vsub.s32 0, %v375_v6  ;;  %v384_v11 = vsub.s32 2, %v375_v6  ;;  %s1386_s7 = scalar_lea.hbm %s2569_s5, %s2573_s13 }
  0x3f   : > { %311 = vrot.lane.b32.xlu0 %v302_v20, %s1975_s17  ;;  %394 = vmatpush1.msra.mxu0 %v363_v21  ;;  %v351_v33 = vld [vmem:[%s2565_s1 + $0xd8] sm:$0xff]  ;;  %v349_v35 = vld [vmem:[%s2565_s1 + $0xc8] sm:$0xff]  ;;  %v348_v36 = vld [vmem:[%s2565_s1 + $0xc0] sm:$0xff]  ;;  %vm620_vm4 = vcmp.ge.s32.totalorder %v2287_v10, 32  ;;  %vm621_vm5 = vcmp.lt.s32.totalorder %v2287_v10, 64  ;;  %vm533_vm6 = vcmp.lt.s32.totalorder %v2287_v10, 32 }
  0x40   : > { %1627 = vmatpush3.msra.mxu1 %v365_v22  ;;  %395 = vmatprep.subr.mxu0 %v361_v23  ;;  %v350_v37 = vld [vmem:[%s2565_s1 + $0xd0] sm:$0xff]  ;;  %v345_v39 = vld [vmem:[%s2565_s1 + $0xa8] sm:$0xff]  ;;  %v347_v40 = vld [vmem:[%s2565_s1 + $0xb8] sm:$0xff]  ;;  %vm853_vm9 = vcmp.ge.s32.totalorder %v2287_v10, 64  ;;  %vm854_vm10 = vcmp.lt.s32.totalorder %v2287_v10, 96  ;;  %vm1014_vm12 = vcmp.ge.s32.totalorder %v2287_v10, 96 }
  0x41   : > { %1628 = vmatprep.subr.mxu1 %v1971_v0  ;;  %396 = vmatpush1.msra.mxu0 %v360_v24  ;;  %v346_v38 = vld [vmem:[%s2565_s1 + $0xb0] sm:$0xff]  ;;  %v343_v41 = vld [vmem:[%s2565_s1 + $0x98] sm:$0xff]  ;;  %v344_v43 = vld [vmem:[%s2565_s1 + $0xa0] sm:$0xff]  ;;  %s1388_s18 = sshll.u32 %s279_s14, 4  ;;  %p2581_p11 = scmp.ne.s32.totalorder %s2575_s8, 0  ;;  %s1389_s18 = int_to_ptr.vmem [resolvable:$true] %s1388_s18 }
  0x42   : > { %1629 = vmatpush3.msra.mxu1 %v362_v25  ;;  %397 = vmatprep.subr.mxu0 %v358_v26  ;;  %v342_v42 = vld [vmem:[%s2565_s1 + $0x90] sm:$0xff]  ;;  %v340_v44 = vld [vmem:[%s2565_s1 + $0x80] sm:$0xff]  ;;  %v339_v45 = vld [vmem:[%s2565_s1 + $0x78] sm:$0xff]  ;;  %s1872_s10 = scalar_lea.vmem %s1389_s18, 128  ;;  %s1976_s12 = smov [#allocation5]  }
  0x43   : > { %1630 = vmatprep.subr.mxu1 %v1971_v0  ;;  %398 = vmatpush1.msra.mxu0 %v357_v27  ;;  %v341_v46 = vld [vmem:[%s2565_s1 + $0x88] sm:$0xff]  ;;  %v336_v48 = vld [vmem:[%s2565_s1 + $0x60] sm:$0xff]  ;;  %v338_v49 = vld [vmem:[%s2565_s1 + $0x70] sm:$0xff]  ;;  %p1873_p10 = scmp.ne.s32.totalorder %s1389_s18, %s1872_s10  ;;  %s1876_s17 = sshll.u32 %s1976_s12, 4  ;;  %s1877_s17 = int_to_ptr.vmem [resolvable:$false] %s1876_s17 }
  0x44   : > { %1631 = vmatpush3.msra.mxu1 %v359_v28  ;;  %399 = vmatprep.subr.mxu0 %v355_v29  ;;  %v337_v47 = vld [vmem:[%s2565_s1 + $0x68] sm:$0xff]  ;;  %v334_v50 = vld [vmem:[%s2565_s1 + $0x50] sm:$0xff]  ;;  %v335_v52 = vld [vmem:[%s2565_s1 + $0x58] sm:$0xff]  ;;  %s1878_s20 = scalar_lea.vmem %s1877_s17, 256  ;;  %p1879_p5 = scmp.lt.s32.totalorder %s1389_s18, %s1877_s17 }
  0x45   : > { %1632 = vmatprep.subr.mxu1 %v1971_v0  ;;  %400 = vmatpush1.msra.mxu0 %v354_v30  ;;  %v333_v51 = vld [vmem:[%s2565_s1 + $0x48] sm:$0xff]  ;;  %v331_v53 = vld [vmem:[%s2565_s1 + $0x38] sm:$0xff]  ;;  %v330_v54 = vld [vmem:[%s2565_s1 + $0x30] sm:$0xff]  ;;  %p1874_p12 = pnand %p1873_p10, %p2581_p11  ;;  %p1880_p7 = scmp.lt.s32.totalorder %s1878_s20, %s1872_s10 }
  0x46   : > { %1633 = vmatpush3.msra.mxu1 %v356_v31  ;;  %401 = vmatprep.subr.mxu0 %v352_v32  ;;  %v332_v55 = vld [vmem:[%s2565_s1 + $0x40] sm:$0xff]  ;;  %v327_v57 = vld [vmem:[%s2565_s1 + $0x18] sm:$0xff]  ;;  %v329_v58 = vld [vmem:[%s2565_s1 + $0x28] sm:$0xff] }
  0x47   : > { %1634 = vmatprep.subr.mxu1 %v1971_v0  ;;  %402 = vmatpush1.msra.mxu0 %v351_v33  ;;  %v328_v56 = vld [vmem:[%s2565_s1 + $0x20] sm:$0xff]  ;;  %v325_v59 = vld [vmem:[%s2565_s1 + $0x8] sm:$0xff]  ;;  %v326_v61 = vld [vmem:[%s2565_s1 + $0x10] sm:$0xff]  ;;  %p1875_p4 = pneg %p1874_p12  ;;  %p1881_p8 = por %p1880_p7, %p1879_p5 }
  0x48   : > { %1635 = vmatpush3.msra.mxu1 %v353_v34  ;;  %403 = vmatprep.subr.mxu0 %v349_v35  ;;  %v324_v60 = vld [vmem:[%s2565_s1] sm:$0xff]  ;;  %vm622_vm7 = vmand %vm620_vm4, %vm621_vm5  ;;  %v1184_v6 = vld [vmem:[%s2566_s2 + $0x90] sm:$0xff] }
  0x49   : > { %1636 = vmatprep.subr.mxu1 %v1971_v0  ;;  %404 = vmatpush1.msra.mxu0 %v348_v36  ;;  %v372_v8 = vld [vmem:[%s2567_s3] ss:$8 sm:$0x7]  ;;  %vm2315_vm11 = vmand %vm853_vm9, %vm854_vm10  ;;  %v1269_v36 = vld [vmem:[%s2566_s2 + $0x78] sm:$0xff]  ;;  %p1882_p9 = pnand %p1881_p8, %p1875_p4 }
  0x4a   : > { %1637 = vmatpush3.msra.mxu1 %v350_v37  ;;  %405 = vmatprep.subr.mxu0 %v346_v38  ;;  %v381_v12 = vrot.slane %v372_v8, %v380_v7  ;;  %v385_v18 = vrot.slane %v372_v8, %v384_v11  ;;  %v1185_v5 = vld [vmem:[%s2566_s2 + $0xa0] sm:$0xff]  ;;  %v1180_v11 = vld [vmem:[%s2566_s2 + $0x50] sm:$0xff] }
  0x4b   : > { %1638 = vmatprep.subr.mxu1 %v1971_v0  ;;  %406 = vmatpush1.msra.mxu0 %v345_v39  ;;  %v1183_v7 = vld [vmem:[%s2566_s2 + $0x80] sm:$0xff] }
  0x4c   : > { %1639 = vmatpush3.msra.mxu1 %v347_v40  ;;  %407 = vmatprep.subr.mxu0 %v343_v41 }
  0x4d   : > { %1640 = vmatprep.subr.mxu1 %v1971_v0  ;;  %408 = vmatpush1.msra.mxu0 %v342_v42 }
  0x4e   : > { %1641 = vmatpush3.msra.mxu1 %v344_v43  ;;  %409 = vmatprep.subr.mxu0 %v340_v44 }
  0x4f   : > { %1642 = vmatprep.subr.mxu1 %v1971_v0  ;;  %410 = vmatpush1.msra.mxu0 %v339_v45 }
  0x50   : > { %1643 = vmatpush3.msra.mxu1 %v341_v46  ;;  %411 = vmatprep.subr.mxu0 %v337_v47 }
  0x51   : > { %1644 = vmatprep.subr.mxu1 %v1971_v0  ;;  %412 = vmatpush1.msra.mxu0 %v336_v48 }
  0x52   : > { %1645 = vmatpush3.msra.mxu1 %v338_v49  ;;  %413 = vmatprep.subr.mxu0 %v334_v50 }
  0x53   : > { %1646 = vmatprep.subr.mxu1 %v1971_v0  ;;  %414 = vmatpush1.msra.mxu0 %v333_v51 }
  0x54   : > { %1647 = vmatpush3.msra.mxu1 %v335_v52  ;;  %415 = vmatprep.subr.mxu0 %v331_v53 }
  0x55   : > { %1648 = vmatprep.subr.mxu1 %v1971_v0  ;;  %416 = vmatpush1.msra.mxu0 %v330_v54 }
  0x56   : > { %1649 = vmatpush3.msra.mxu1 %v332_v55  ;;  %417 = vmatprep.subr.mxu0 %v328_v56 }
  0x57   : > { %1650 = vmatprep.subr.mxu1 %v1971_v0  ;;  %418 = vmatpush1.msra.mxu0 %v327_v57 }
  0x58   : > { %1651 = vmatpush3.msra.mxu1 %v329_v58  ;;  %419 = vmatprep.subr.mxu0 %v325_v59 }
  0x59   : > { %1652 = vmatprep.subr.mxu1 %v1971_v0  ;;  %420 = vmatpush1.msra.mxu0 %v324_v60 }
  0x5a   : > { %1653 = vmatpush3.msra.mxu1 %v326_v61  ;;  %1657 = vmatprep.subr.mxu0 %v1971_v0 }
  0x5b   : > { %1662 = vmatprep.subr.mxu1 %v1971_v0 }
  0xac   : > { %v308_v62 = vpop.permute.xlu0 %307 }
  0xad   : > { %v319_v1 = vsel %vm318_vm1, %v2133_v15, %v308_v62  ;;  %v377_v15 = vrot.slane %v372_v8, %v376_v9  ;;  %v1182_v8 = vld [vmem:[%s2566_s2 + $0x70] sm:$0xff]  ;;  %v1181_v9 = vld [vmem:[%s2566_s2 + $0x60] sm:$0xff] }
  0xaf   : > { %v316_v63 = vpop.permute.xlu1 %315 }
  0xb1   : > { %v312_v2 = vpop.permute.xlu0 %311 }
  0xb2   : > { %v321_v3 = vsel %vm320_vm2, %v319_v1, %v312_v2  ;;  %v1189_v1 = vld [vmem:[%s2566_s2 + $0xe0] sm:$0xff]  ;;  %v1188_v2 = vld [vmem:[%s2566_s2 + $0xd0] sm:$0xff] }
  0xb3   : > { %v323_v4 = vsel %vm322_vm3, %v321_v3, %v316_v63  ;;  %v1190_v63 = vld [vmem:[%s2566_s2 + $0xf0] sm:$0xff]  ;;  %v1187_v3 = vld [vmem:[%s2566_s2 + $0xc0] sm:$0xff] }
  0xb4   : > { %454 = vmatmul.mubr.f32.vlgmr.msra.gmra.mxu0 %v323_v4  ;;  %1655 = vmatmul.mubr.f32.vlgmr.msra.gmra.mxu1 %v323_v4  ;;  %v1186_v4 = vld [vmem:[%s2566_s2 + $0xb0] sm:$0xff] }
  0xb5   : > { %1659 = vmatprep.mubr.msk.f32.mxu0 %vm1972_vm0, %v1971_v0  ;;  %1664 = vmatprep.mubr.msk.f32.mxu1 %vm1972_vm0, %v1971_v0 }
 0x174   : > { %v455_v13 = vpop.f32.mrf.mxu0  ;;  %v526_v14 = vpop.f32.mrf.mxu1 }
 0x175   : > { %v456_v20 = vadd.f32 %v455_v13, %v377_v15  ;;  %v2294_v21 = vadd.f32 %v526_v14, %v385_v18 }
 0x176   : > { %v457_v16 = vpop.f32.mrf.mxu0  ;;  %v1656_v17 = vpop.f32.mrf.mxu1 }
 0x177   : > { %v458_v19 = vadd.f32 %v457_v16, %v381_v12  ;;  %v1179_v12 = vld [vmem:[%s2566_s2 + $0x40] sm:$0xff] }
 0x179   : > { %1658 = vmatpush3.xpose.msra.mxu0 %v458_v19  ;;  %1663 = vmatpush3.xpose.msra.mxu1 %v458_v19 }
 0x17a   : > { %1667 = vmatprep.subr.mxu0 %v1971_v0  ;;  %1672 = vmatprep.subr.mxu1 %v1971_v0 }
 0x17c   : > { %1660 = vmatmul.mubr.msk.f32.vlgmr.msra.gmra.mxu0 %vm533_vm6, %v456_v20  ;;  %1665 = vmatmul.mubr.msk.f32.vlgmr.msra.gmra.mxu1 %vm622_vm7, %v456_v20 }
 0x17d   : > { %1668 = vmatpush3.msk.msra.mxu0 %vm622_vm7, %v2294_v21  ;;  %1673 = vmatpush3.msk.msra.mxu1 %vm533_vm6, %v2294_v21 }
 0x17e   : > { %1669 = vmatprep.mubr.msk.f32.mxu0 %vm1972_vm0, %v1971_v0  ;;  %1677 = vmatprep.subr.mxu0 %v1971_v0 }
 0x17f   : > { %1674 = vmatprep.mubr.msk.f32.mxu1 %vm1972_vm0, %v1971_v0  ;;  %1682 = vmatprep.subr.mxu1 %v1971_v0 }
 0x23c   : > { %v602_v22 = vpop.f32.mrf.mxu0  ;;  %v690_v23 = vpop.f32.mrf.mxu1 }
 0x23d   : > { %v694_v24 = vsel %vm606_vm8, %v690_v23, -inf  ;;  %v607_v32 = vsel %vm606_vm8, %v602_v22, -inf }
 0x23e   : > { %695 = vmax.xlane.f32.xlu1 %v694_v24  ;;  %v1661_v25 = vpop.f32.mrf.mxu0  ;;  %v1666_v26 = vpop.f32.mrf.mxu1  ;;  %v1178_v24 = vld [vmem:[%s2566_s2 + $0x30] sm:$0xff] }
 0x23f   : > { %v1177_v25 = vld [vmem:[%s2566_s2 + $0x20] sm:$0xff]  ;;  %v1176_v26 = vld [vmem:[%s2566_s2 + $0x10] sm:$0xff] }
 0x2c7   : > { %v696_v27 = vpop.xlane.xlu1 %695 }
 0x2c8   : > { %v697_v28 = vsub.f32 %v690_v23, %v696_v27  ;;  %v1175_v27 = vld [vmem:[%s2566_s2] sm:$0xff] }
 0x2ca   : > { %v698_v29 = vmul.f32 1.442695, %v697_v28  ;;  %v1277_v28 = vld [vmem:[%s2566_s2 + $0xf8] sm:$0xff] }
 0x2cc   : > { %1828 = vpow2.f32 %v698_v29  ;;  %v1276_v29 = vld [vmem:[%s2566_s2 + $0xe8] sm:$0xff] }
 0x2d9   : > { %v1829_v30 = vpop.eup %1828 }
 0x2da   : > { %v700_v31 = vsel %vm606_vm8, %v1829_v30, 0.0 }
 0x2db   : > { %701 = vadd.xlane.f32.xlu0 %v700_v31  ;;  %v1274_v31 = vld [vmem:[%s2566_s2 + $0xc8] sm:$0xff] }
 0x2df   : > { %608 = vmax.xlane.f32.xlu0 %v607_v32  ;;  %v1273_v32 = vld [vmem:[%s2566_s2 + $0xb8] sm:$0xff] }
 0x364   : > { %v702_v33 = vpop.xlane.xlu0 %701 }
 0x365   : > { %1830 = vrcp.f32 %v702_v33  ;;  %v1272_v33 = vld [vmem:[%s2566_s2 + $0xa8] sm:$0xff] }
 0x368   : > { %v609_v37 = vpop.xlane.xlu0 %608 }
 0x369   : > { %v610_v38 = vsub.f32 %v602_v22, %v609_v37  ;;  %v1268_v37 = vld [vmem:[%s2566_s2 + $0x68] sm:$0xff] }
 0x36b   : > { %v611_v39 = vmul.f32 1.442695, %v610_v38  ;;  %v1267_v38 = vld [vmem:[%s2566_s2 + $0x58] sm:$0xff] }
 0x36d   : > { %1832 = vpow2.f32 %v611_v39  ;;  %v1266_v39 = vld [vmem:[%s2566_s2 + $0x48] sm:$0xff] }
 0x372   : > { %v1831_v34 = vpop.eup %1830 }
 0x373   : > { %v2307_v35 = vmul.f32 %v1831_v34, %v1829_v30  ;;  %v1275_v30 = vld [vmem:[%s2566_s2 + $0xd8] sm:$0xff] }
 0x374   : > { %v1271_v34 = vld [vmem:[%s2566_s2 + $0x98] sm:$0xff] }
 0x375   : > { %1670 = vmatmul.mubr.msk.f32.vlgmr.msra.gmra.mxu0 %vm606_vm8, %v2307_v35 }
 0x376   : > { %1678 = vmatpush3.xpose.msra.mxu0 %v458_v19  ;;  %1679 = vmatprep.mubr.msk.f32.mxu0 %vm1972_vm0, %v1971_v0 }
 0x377   : > { %1687 = vmatprep.subr.mxu0 %v1971_v0 }
 0x379   : > { %1680 = vmatmul.mubr.msk.f32.vlgmr.msra.gmra.mxu0 %vm2315_vm11, %v456_v20 }
 0x37a   : > { %1688 = vmatpush3.xpose.msra.mxu0 %v458_v19  ;;  %1689 = vmatprep.mubr.msk.f32.mxu0 %vm1972_vm0, %v1971_v0  ;;  %v1833_v44 = vpop.eup %1832 }
 0x37b   : > { %1697 = vmatprep.subr.mxu0 %v1971_v0  ;;  %v613_v47 = vsel %vm606_vm8, %v1833_v44, 0.0 }
 0x37d   : > { %1690 = vmatmul.mubr.msk.f32.vlgmr.msra.gmra.mxu0 %vm1014_vm12, %v456_v20 }
 0x37e   : > { %1729 = vmatprep.mubr.msk.f32.mxu0 %vm1972_vm0, %v1971_v0  ;;  %1698 = vmatpush3.msra.mxu0 %v1190_v63 }
 0x37f   : > { %1699 = vmatprep.subr.mxu0 %v1971_v0 }
 0x380   : > { %1700 = vmatpush3.msra.mxu0 %v1189_v1 }
 0x381   : > { %1701 = vmatprep.subr.mxu0 %v1971_v0 }
 0x382   : > { %1702 = vmatpush3.msra.mxu0 %v1188_v2 }
 0x383   : > { %1703 = vmatprep.subr.mxu0 %v1971_v0 }
 0x384   : > { %1704 = vmatpush3.msra.mxu0 %v1187_v3 }
 0x385   : > { %1705 = vmatprep.subr.mxu0 %v1971_v0 }
 0x386   : > { %1706 = vmatpush3.msra.mxu0 %v1186_v4 }
 0x387   : > { %1707 = vmatprep.subr.mxu0 %v1971_v0 }
 0x388   : > { %1708 = vmatpush3.msra.mxu0 %v1185_v5 }
 0x389   : > { %1709 = vmatprep.subr.mxu0 %v1971_v0 }
 0x38a   : > { %1710 = vmatpush3.msra.mxu0 %v1184_v6 }
 0x38b   : > { %1711 = vmatprep.subr.mxu0 %v1971_v0 }
 0x38c   : > { %1712 = vmatpush3.msra.mxu0 %v1183_v7 }
 0x38d   : > { %1713 = vmatprep.subr.mxu0 %v1971_v0 }
 0x38e   : > { %1714 = vmatpush3.msra.mxu0 %v1182_v8 }
 0x38f   : > { %1715 = vmatprep.subr.mxu0 %v1971_v0 }
 0x390   : > { %1716 = vmatpush3.msra.mxu0 %v1181_v9 }
 0x391   : > { %1717 = vmatprep.subr.mxu0 %v1971_v0 }
 0x392   : > { %1718 = vmatpush3.msra.mxu0 %v1180_v11 }
 0x393   : > { %1719 = vmatprep.subr.mxu0 %v1971_v0 }
 0x394   : > { %1720 = vmatpush3.msra.mxu0 %v1179_v12 }
 0x395   : > { %1721 = vmatprep.subr.mxu0 %v1971_v0 }
 0x396   : > { %1722 = vmatpush3.msra.mxu0 %v1178_v24 }
 0x397   : > { %1723 = vmatprep.subr.mxu0 %v1971_v0 }
 0x398   : > { %1724 = vmatpush3.msra.mxu0 %v1177_v25 }
 0x399   : > { %1725 = vmatprep.subr.mxu0 %v1971_v0 }
 0x39a   : > { %1726 = vmatpush3.msra.mxu0 %v1176_v26 }
 0x39b   : > { %1727 = vmatprep.subr.mxu0 %v1971_v0 }
 0x39c   : > { %1728 = vmatpush3.msra.mxu0 %v1175_v27 }
 0x435   : > { %v2330_v40 = vpop.f32.mrf.mxu0 }
 0x437   : > { %v1671_v41 = vpop.f32.mrf.mxu0 }
 0x438   : > { %v1265_v41 = vld [vmem:[%s2566_s2 + $0x38] sm:$0xff] }
 0x439   : > { %v923_v42 = vpop.f32.mrf.mxu0 }
 0x43a   : > { %v927_v43 = vsel %vm606_vm8, %v923_v42, -inf }
 0x43b   : > { %928 = vmax.xlane.f32.xlu1 %v927_v43  ;;  %v1681_v45 = vpop.f32.mrf.mxu0 }
 0x43d   : > { %v1084_v46 = vpop.f32.mrf.mxu0 }
 0x43e   : > { %v1088_v48 = vsel %vm606_vm8, %v1084_v46, -inf }
 0x43f   : > { %614 = vadd.xlane.f32.xlu1 %v613_v47  ;;  %1089 = vmax.xlane.f32.xlu0 %v1088_v48  ;;  %v1691_v49 = vpop.f32.mrf.mxu0 }
 0x4c4   : > { %v929_v50 = vpop.xlane.xlu1 %928 }
 0x4c5   : > { %v930_v51 = vsub.f32 %v923_v42, %v929_v50  ;;  %v1264_v42 = vld [vmem:[%s2566_s2 + $0x28] sm:$0xff]  ;;  %v1263_v50 = vld [vmem:[%s2566_s2 + $0x18] sm:$0xff] }
 0x4c7   : > { %v931_v52 = vmul.f32 1.442695, %v930_v51  ;;  %v1262_v51 = vld [vmem:[%s2566_s2 + $0x8] sm:$0xff] }
 0x4c8   : > { %v615_v53 = vpop.xlane.xlu1 %614  ;;  %v1090_v54 = vpop.xlane.xlu0 %1089 }
 0x4c9   : > { %1834 = vpow2.f32 %v931_v52  ;;  %v1091_v55 = vsub.f32 %v1084_v46, %v1090_v54 }
 0x4ca   : > { %1836 = vrcp.f32 %v615_v53 }
 0x4cb   : > { %v1092_v56 = vmul.f32 1.442695, %v1091_v55 }
 0x4cd   : > { %1838 = vpow2.f32 %v1092_v56 }
 0x4d6   : > { %v1835_v57 = vpop.eup %1834 }
 0x4d7   : > { %v1837_v58 = vpop.eup %1836  ;;  %v933_v59 = vsel %vm606_vm8, %v1835_v57, 0.0 }
 0x4d8   : > { %934 = vadd.xlane.f32.xlu0 %v933_v59  ;;  %v617_v60 = vmul.f32 %v1837_v58, %v1833_v44  ;;  %v1350_v58 = vld [vmem:[%s2567_s3 + $0x3] ss:$0 sm:$0xff] }
 0x4da   : > { %v1839_v61 = vpop.eup %1838  ;;  %1675 = vmatmul.mubr.msk.f32.vlgmr.msra.gmra.mxu1 %vm606_vm8, %v617_v60  ;;  %v705_v17 = vadd.f32 %v2307_v35, %v617_v60  ;;  %v1270_v35 = vld [vmem:[%s2566_s2 + $0x88] sm:$0xff] }
 0x4db   : > { %1683 = vmatpush3.msk.msra.mxu1 %vm2315_vm11, %v2294_v21  ;;  %v1094_v62 = vsel %vm606_vm8, %v1839_v61, 0.0  ;;  %1684 = vmatprep.mubr.msk.f32.mxu1 %vm1972_vm0, %v1971_v0 }
 0x4dc   : > { %1095 = vadd.xlane.f32.xlu1 %v1094_v62  ;;  %1692 = vmatprep.subr.mxu1 %v1971_v0 }
 0x561   : > { %v935_v13 = vpop.xlane.xlu0 %934 }
 0x562   : > { %1840 = vrcp.f32 %v935_v13 }
 0x565   : > { %v1096_v14 = vpop.xlane.xlu1 %1095 }
 0x566   : > { %1842 = vrcp.f32 %v1096_v14 }
 0x56f   : > { %v1841_v15 = vpop.eup %1840 }
 0x570   : > { %v937_v16 = vmul.f32 %v1841_v15, %v1835_v57 }
 0x572   : > { %1685 = vmatmul.mubr.msk.f32.vlgmr.msra.gmra.mxu1 %vm606_vm8, %v937_v16  ;;  %v938_v19 = vadd.f32 %v937_v16, %v705_v17 }
 0x573   : > { %v1843_v18 = vpop.eup %1842  ;;  %1693 = vmatpush3.msk.msra.mxu1 %vm1014_vm12, %v2294_v21  ;;  %1694 = vmatprep.mubr.msk.f32.mxu1 %vm1972_vm0, %v1971_v0 }
 0x574   : > { %v1098_v20 = vmul.f32 %v1843_v18, %v1839_v61  ;;  %1732 = vmatprep.subr.mxu1 %v1971_v0 }
 0x576   : > { %v1099_v22 = vadd.f32 %v1098_v20, %v938_v19  ;;  %1695 = vmatmul.mubr.msk.f32.vlgmr.msra.gmra.mxu1 %vm606_vm8, %v1098_v20 }
 0x577   : > { %1764 = vmatprep.mubr.msk.f32.mxu1 %vm1972_vm0, %v1971_v0  ;;  %1733 = vmatpush3.msra.mxu1 %v1277_v28 }
 0x578   : > { %v1360_v23 = vmul.f32 0.25, %v1099_v22  ;;  %1734 = vmatprep.subr.mxu1 %v1971_v0 }
 0x579   : > { %1735 = vmatpush3.msra.mxu1 %v1276_v29 }
 0x57a   : > { %1361 = vst.msk [vmem:[%s2406_s15] sm:$0xff] %vm606_vm8, %v1360_v23  ;;  %1736 = vmatprep.subr.mxu1 %v1971_v0 }
 0x57b   : > { %1737 = vmatpush3.msra.mxu1 %v1275_v30 }
 0x57c   : > { %1738 = vmatprep.subr.mxu1 %v1971_v0 }
 0x57d   : > { %1739 = vmatpush3.msra.mxu1 %v1274_v31 }
 0x57e   : > { %1740 = vmatprep.subr.mxu1 %v1971_v0 }
 0x57f   : > { %1741 = vmatpush3.msra.mxu1 %v1273_v32 }
 0x580   : > { %1742 = vmatprep.subr.mxu1 %v1971_v0 }
 0x581   : > { %1743 = vmatpush3.msra.mxu1 %v1272_v33 }
 0x582   : > { %1744 = vmatprep.subr.mxu1 %v1971_v0 }
 0x583   : > { %1745 = vmatpush3.msra.mxu1 %v1271_v34 }
 0x584   : > { %1746 = vmatprep.subr.mxu1 %v1971_v0 }
 0x585   : > { %1747 = vmatpush3.msra.mxu1 %v1270_v35 }
 0x586   : > { %1748 = vmatprep.subr.mxu1 %v1971_v0 }
 0x587   : > { %1749 = vmatpush3.msra.mxu1 %v1269_v36 }
 0x588   : > { %1750 = vmatprep.subr.mxu1 %v1971_v0 }
 0x589   : > { %1751 = vmatpush3.msra.mxu1 %v1268_v37 }
 0x58a   : > { %1752 = vmatprep.subr.mxu1 %v1971_v0 }
 0x58b   : > { %1753 = vmatpush3.msra.mxu1 %v1267_v38 }
 0x58c   : > { %1754 = vmatprep.subr.mxu1 %v1971_v0 }
 0x58d   : > { %1755 = vmatpush3.msra.mxu1 %v1266_v39 }
 0x58e   : > { %1756 = vmatprep.subr.mxu1 %v1971_v0 }
 0x58f   : > { %1757 = vmatpush3.msra.mxu1 %v1265_v41 }
 0x590   : > { %1758 = vmatprep.subr.mxu1 %v1971_v0 }
 0x591   : > { %1759 = vmatpush3.msra.mxu1 %v1264_v42 }
 0x592   : > { %1760 = vmatprep.subr.mxu1 %v1971_v0 }
 0x593   : > { %1761 = vmatpush3.msra.mxu1 %v1263_v50 }
 0x594   : > { %1762 = vmatprep.subr.mxu1 %v1971_v0  ;;  %v1278_v0 = vld [vmem:[%s2567_s3 + $0x2] ss:$0 sm:$0xff] }
 0x595   : > { %1763 = vmatpush3.msra.mxu1 %v1262_v51 }
 0x59a   : > { %v849_v10 = vpop.f32.mrf.mxu1 }
 0x59b   : > { %v850_v44 = vadd.f32 %v849_v10, %v2330_v40  ;;  %v1191_v40 = vld [vmem:[%s2567_s3 + $0x1] ss:$0 sm:$0xff] }
 0x59c   : > { %v1676_v21 = vpop.f32.mrf.mxu1 }
 0x632   : > { %v1009_v43 = vpop.f32.mrf.mxu1 }
 0x633   : > { %v1013_v46 = vadd.f32 %v1009_v43, %v850_v44 }
 0x634   : > { %v1686_v45 = vpop.f32.mrf.mxu1 }
 0x636   : > { %v1170_v47 = vpop.f32.mrf.mxu1 }
 0x637   : > { %v1174_v48 = vadd.f32 %v1170_v47, %v1013_v46 }
 0x638   : > { %v1696_v49 = vpop.f32.mrf.mxu1 }
 0x639   : > { %1730 = vmatmul.mubr.f32.vlgmr.msra.gmra.mxu0 %v1174_v48 }
 0x6f9   : > { %v1258_v52 = vpop.f32.mrf.mxu0 }
 0x6fa   : > { %v1259_v53 = vadd.f32 %v1258_v52, %v1191_v40 }
 0x6fb   : > { %v1731_v54 = vpop.f32.mrf.mxu0 }
 0x6fc   : > { %1359 = vst [vmem:[%s279_s14] sm:$0xff] %v1259_v53  ;;  %1765 = vmatmul.mubr.f32.vlgmr.msra.gmra.mxu1 %v1259_v53 }
 0x7bc   : > { %v1345_v55 = vpop.f32.mrf.mxu1 }
 0x7bd   : > { %v1346_v56 = vadd.f32 %v1345_v55, %v1278_v0 }
 0x7be   : > { %v1766_v57 = vpop.f32.mrf.mxu1 }
 0x7bf   : > { %v1349_v59 = vmax.f32 %v1346_v56, 0.0 }
 0x7c1   : > { %v1351_v60 = vmul.f32 %v1350_v58, %v1349_v59 }
 0x7c3   : > { %v1352_v61 = vsel %vm318_vm1, %v1351_v60, 0.0 }
 0x7c4   : > { %1353 = vadd.xlane.f32.xlu0 %v1352_v61 }
 0x7c5   : > { %1885 = shalt.err (!%p1882_p9)
}
 0x7c6   : > { %s1886_s26 = scalar_lea.hbm %s1386_s7, 128  ;;  %s1890_s11 = scalar_lea.hbm %s2569_s5, 512 }
 0x7c7   : > { %p1887_p13 = scmp.ne.s32.totalorder %s1386_s7, %s1886_s26  ;;  %p1891_p2 = scmp.lt.s32.totalorder %s1386_s7, %s2569_s5 }
 0x7c8   : > { %p1892_p3 = scmp.lt.s32.totalorder %s1890_s11, %s1886_s26 }
 0x7c9   : > { %p1888_p1 = pnand %p1887_p13, %p2581_p11 }
 0x7ca   : > { %p1893_p6 = por %p1892_p3, %p1891_p2 }
 0x7cb   : > { %p1889_p0 = pneg %p1888_p1 }
 0x7cd   : > { %p1894_p10 = pnand %p1893_p6, %p1889_p0 }
 0x7cf   : > { %1897 = shalt.err (!%p1894_p10)
}
 0x7d0   : > { %1772 = dma.vmem_to_hbm [thread:$0]  (%p2581_p11), %s1389_s18, 128, %s1386_s7, %s1367_s19  }
 0x7d1   : > { %s2582_s10 = sshll.u32 %s2034_s25, 7  ;;  %s1401_s14 = sshll.u32 %s2406_s15, 4  ;;  %s1402_s14 = int_to_ptr.vmem [resolvable:$true] %s1401_s14 }
 0x7d2   : > { %s1399_s20 = scalar_lea.hbm %s2570_s6, %s2582_s10  ;;  %s1372_s13 = scalar_lea.sflag [#allocation7], %s2103_s28 }
 0x7d3   : > { %s1898_s29 = scalar_lea.vmem %s1402_s14, 128  ;;  %s1977_s26 = smov [#allocation6]  }
 0x7d4   : > { %p1899_p12 = scmp.ne.s32.totalorder %s1402_s14, %s1898_s29  ;;  %s1902_s11 = sshll.u32 %s1977_s26, 4  ;;  %s1903_s11 = int_to_ptr.vmem [resolvable:$false] %s1902_s11 }
 0x7d5   : > { %s1904_s16 = scalar_lea.vmem %s1903_s11, 256  ;;  %p1905_p7 = scmp.lt.s32.totalorder %s1402_s14, %s1903_s11 }
 0x7d6   : > { %p1900_p4 = pnand %p1899_p12, %p2581_p11  ;;  %p1906_p8 = scmp.lt.s32.totalorder %s1904_s16, %s1898_s29 }
 0x7d8   : > { %p1901_p5 = pneg %p1900_p4  ;;  %p1907_p9 = por %p1906_p8, %p1905_p7 }
 0x7da   : > { %p1908_p13 = pnand %p1907_p9, %p1901_p5 }
 0x7dc   : > { %1911 = shalt.err (!%p1908_p13)
}
 0x7dd   : > { %s1912_s7 = scalar_lea.hbm %s1399_s20, 128  ;;  %s1916_s18 = scalar_lea.hbm %s2570_s6, 512 }
 0x7de   : > { %p1913_p1 = scmp.ne.s32.totalorder %s1399_s20, %s1912_s7  ;;  %p1917_p3 = scmp.lt.s32.totalorder %s1399_s20, %s2570_s6 }
 0x7df   : > { %p1918_p6 = scmp.lt.s32.totalorder %s1916_s18, %s1912_s7 }
 0x7e0   : > { %p1914_p0 = pnand %p1913_p1, %p2581_p11 }
 0x7e1   : > { %p1919_p10 = por %p1918_p6, %p1917_p3 }
 0x7e2   : > { %p1915_p2 = pneg %p1914_p0 }
 0x7e4   : > { %p1920_p12 = pnand %p1919_p10, %p1915_p2 }
 0x7e6   : > { %1923 = shalt.err (!%p1920_p12)
}
 0x7e7   : > { %1773 = dma.vmem_to_hbm [thread:$0]  (%p2581_p11), %s1402_s14, 128, %s1399_s20, %s1372_s13   ;;  %v1355_v62 = vld [vmem:[%s2567_s3 + $0x4] ss:$0 sm:$0xff]  ;;  %vm1357_vm13 = vcmask 7168  }
 0x7e8   : > { %p287_p4 = scmp.lt.s32.totalorder %s2034_s25, 3 }
 0x7ea   : > { %s2589_s25 = smov (!%p287_p4, %s2034_s25), 3 }
 0x7eb   : > { %s1534_s12 = sshll.u32 %s2589_s25, 3 }
 0x7ec   : > { %s290_s16 = scalar_lea.vmem %s2568_s4, %s1534_s12 }
 0x84d   : > { %v1354_v63 = vpop.xlane.xlu0 %1353 }
 0x84e   : > { %v1356_v1 = vadd.f32 %v1355_v62, %v1354_v63 }
 0x850   : > { %1358 = vst.msk [vmem:[%s290_s16] sm:$0xff] %vm1357_vm13, %v1356_v1 }
 0x851 PF: > { %p1788_p11 = scmp.ge.s32.totalorder %s1966_s24, 2  ;;  %s1420_s8 = sand.u32 1, %s1954_s21  }
 0x852   : > { %p2583_p5 = scmp.ne.s32.totalorder %s2576_s9, 0  ;;  %s1421_s25 = scalar_lea.sflag [#allocation4], %s1420_s8 }
 0x854   : > { %p1781_p7 = pnand %p1788_p11, %p2583_p5 }
 0x856   : > { %p1782_p8 = pneg %p1781_p7 }
 0x858   : > { %1945 = dma.done.wait (%p1782_p8), %s1421_s25, 128  }
 0x859   : > { %1947 = vsyncadd (%p1782_p8), %s1421_s25, 4294967168  ;;  %s1430_s20 = scalar_lea.sflag [#allocation7], %s1420_s8 }
 0x85a   : > { %1949 = dma.done.wait (%p1782_p8), %s1430_s20, 128  }
 0x85b   : > { %1951 = vsyncadd (%p1782_p8), %s1430_s20, 4294967168  ;;  %p23_p9 = scmp.ge.s32.totalorder %s2038_s27, 6   ;;  %s2584_s21 = smov %s1958_s22 }
 0x85c   : > { %s2585_s22 = smov %s1962_s23  ;;  %s2586_s23 = smov %s2050_s30 }
 0x85d   : > { %s2587_s24 = smov %s2038_s27  ;;  %25 = sbr.rel (!%p23_p9) target bundleno = 7 (0x7), region = 112 }
 0x862   :  { %1435 = vsyncpa [#allocation3], 1 }
 0x863   :  { %1437 = vsyncpa [#allocation3 + $0x1], 1 }
 0x864   :  { %1438 = vsyncpa [#allocation4], 1 }
 0x865   :  { %1440 = vsyncpa [#allocation4 + $0x1], 1 }
 0x866   :  { %1441 = vsyncpa [#allocation7], 1 }
 0x867   :  { %1443 = vsyncpa [#allocation7 + $0x1], 1 }

</bundles_post_ra>
